<compile_context>
chip_gen: v7x
topology: tpu7x:2x2x1
jax: 0.10.0
libtpu: 0.0.40
codegen_flags: <defaults>
</compile_context>

<pallas_src>
import jax
import jax.numpy as jnp
from jax.experimental import pallas as pl
from jax.experimental.pallas import tpu as pltpu


def _round_up(x, m):
    return ((x + m - 1) // m) * m


def _patch_embed_kernel(p_ref, w_ref, b_ref, o_ref):
    # p_ref: (TM, Kp) patch tile      (compute_dtype, streamed / double-buffered)
    # w_ref: (Kp, N)  projection W    (compute_dtype, VMEM-resident, single copy)
    # b_ref: (1, N)   bias            (f32, VMEM-resident, single copy)
    # o_ref: (TM, N)  embedded patches (out_dtype)
    acc = jnp.dot(p_ref[...], w_ref[...], preferred_element_type=jnp.float32)
    o_ref[...] = (acc + b_ref[...]).astype(o_ref.dtype)


def patch_embed(x, weight, bias, patch_size, *, compute_dtype=jnp.bfloat16,
                out_dtype=None, tile_m=1024):
    """x: (B, C, H, W); weight: (E, C, ph, pw); bias: (E,) -> (B, num_patches, E).

    out_dtype=None returns compute_dtype (bf16 fast path); pass jnp.float32 for a
    PyTorch-exact-precision path (compute_dtype=jnp.float32, out_dtype=jnp.float32).
    """
    B, C, H, W = x.shape
    E = weight.shape[0]
    ph, pw = patch_size
    assert H % ph == 0 and W % pw == 0, "image size must be divisible by patch size"
    gh, gw = H // ph, W // pw
    num_patches = gh * gw
    M = B * num_patches
    K = C * ph * pw
    N = _round_up(E, 128)               # lane-dense output stores
    out_dtype = compute_dtype if out_dtype is None else out_dtype

    # Pad K up to a multiple of 128 (lane-dense LHS loads, no ragged MXU tail)
    # only when the zero-pad costs <= 25% extra LHS bytes (skips tiny-K configs).
    Kp = K
    if K % 128 != 0:
        k_target = _round_up(K, 128)
        if 4 * k_target <= 5 * K:
            Kp = k_target

    # --- patchify: (B,C,H,W) -> (M, K), feature order (c, kh, kw) ------------
    # Cast to compute_dtype BEFORE the shuffle so this HBM pass moves half the
    # bytes (XLA fuses the cast into the transpose copy).  See TODO(synk) above
    # for why this pass is not (yet) folded into the kernel.
    p = x.astype(compute_dtype).reshape(B, C, gh, ph, gw, pw)
    p = jnp.transpose(p, (0, 2, 4, 1, 3, 5)).reshape(M, K)

    # Conv weight (E, C, ph, pw) -> (Kp, N) with matching (c, kh, kw) order;
    # bias -> (1, N) in f32 (epilogue stays f32).
    w2d = weight.reshape(E, K).T.astype(compute_dtype)
    b2d = bias.astype(jnp.float32).reshape(1, E)
    if Kp != K:
        w2d = jnp.pad(w2d, ((0, Kp - K), (0, 0)))
    if N != E:
        w2d = jnp.pad(w2d, ((0, 0), (0, N - E)))
        b2d = jnp.pad(b2d, ((0, 0), (0, N - E)))

    # --- M tiling: pick the largest tile that keeps VMEM comfortable ---------
    csize = jnp.dtype(compute_dtype).itemsize
    osize = jnp.dtype(out_dtype).itemsize
    tm = _round_up(max(min(tile_m, M), 16), 16)     # bf16 sublane packing = 16

    def _vmem_need(t):
        return (2 * t * Kp * csize        # LHS tiles, double-buffered
                + Kp * N * csize          # weight, single copy (Buffered(1))
                + N * 4                   # bias,   single copy (Buffered(1))
                + 2 * t * N * osize)      # output tiles, double-buffered

    # Keep the budget <= ~28 MiB so it fits v7x's 64 MiB per-TC VMEM (and every
    # older generation) with plenty of headroom for Mosaic internal scratch.
    while tm > 256 and _vmem_need(tm) > (28 << 20):
        tm //= 2

    m_pad = _round_up(M, tm)
    if m_pad != M or Kp != K:
        p = jnp.pad(p, ((0, m_pad - M), (0, Kp - K)))
    grid_m = m_pad // tm

    vmem_limit = int(min(max(_vmem_need(tm) * 13 // 10 + (4 << 20), 32 << 20),
                         64 << 20))

    cost = pl.CostEstimate(
        flops=2 * M * K * E,
        transcendentals=0,
        bytes_accessed=(m_pad * Kp * csize          # streamed patches
                        + Kp * N * csize            # weight (once)
                        + N * 4                     # bias (once)
                        + m_pad * N * osize),       # output
    )

    out2d = pl.pallas_call(
        _patch_embed_kernel,
        out_shape=jax.ShapeDtypeStruct((m_pad, N), out_dtype),
        grid=(grid_m,),
        in_specs=[
            pl.BlockSpec((tm, Kp), lambda i: (i, 0)),                 # streamed LHS
            pl.BlockSpec((Kp, N), lambda i: (0, 0),
                         pipeline_mode=pl.Buffered(1)),               # resident W
            pl.BlockSpec((1, N), lambda i: (0, 0),
                         pipeline_mode=pl.Buffered(1)),               # resident bias
        ],
        out_specs=pl.BlockSpec((tm, N), lambda i: (i, 0)),
        compiler_params=pltpu.CompilerParams(
            dimension_semantics=("parallel",),       # megacore sharding on v7x
            vmem_limit_bytes=vmem_limit),
        cost_estimate=cost,
    )(p, w2d, b2d)

    # norm_layer=None -> nn.Identity(); strip padding and restore (B, P, E).
    # TODO(synk): when E % 128 != 0 the column slice N->E costs an extra HBM pass
    # over the output; consider returning the padded slab and fusing the slice
    # into the consumer for non-aligned embed dims.
    return out2d[:M, :E].reshape(B, num_patches, E)


if __name__ == "__main__":
    # Small shapes consistent with the module: img=16, patch=4, in_c=4, embed_dim=32
    B, C, H, W = 2, 4, 16, 16
    ph = pw = 4
    E = 32

    key = jax.random.PRNGKey(0)
    kx, kw, kb = jax.random.split(key, 3)
    x = jax.random.normal(kx, (B, C, H, W), dtype=jnp.float32)
    weight = jax.random.normal(kw, (E, C, ph, pw), dtype=jnp.float32) * 0.02
    bias = jax.random.normal(kb, (E,), dtype=jnp.float32) * 0.02

    # Reference: strided f32 conv (== PyTorch Conv2d with kernel=stride=patch), NCHW.
    ref = jax.lax.conv_general_dilated(
        x, weight, window_strides=(ph, pw), padding="VALID",
        dimension_numbers=("NCHW", "OIHW", "NCHW"),
        precision=jax.lax.Precision.HIGHEST)
    ref = ref + bias[None, :, None, None]
    ref = ref.reshape(B, E, -1).transpose(0, 2, 1)      # flatten(2).transpose(1,2)

    # Fast path: bf16 compute, bf16 output (default).
    out = patch_embed(x, weight, bias, (ph, pw))
    out = jax.block_until_ready(out)
    assert out.shape == (B, (H // ph) * (W // pw), E)
    assert out.dtype == jnp.bfloat16
    assert jnp.allclose(out.astype(jnp.float32), ref, atol=2e-2, rtol=2e-2)

    # Precision fallback path: f32 compute, f32 output (tighter tolerance).
    out_f32 = patch_embed(x, weight, bias, (ph, pw),
                          compute_dtype=jnp.float32, out_dtype=jnp.float32)
    out_f32 = jax.block_until_ready(out_f32)
    assert out_f32.dtype == jnp.float32
    assert jnp.allclose(out_f32, ref, atol=5e-3, rtol=5e-3)

    print("KERNEL_OK")
</pallas_src>

<mosaic_0001>
module attributes {stable_mosaic.version = 11 : i64} {
  func.func @_patch_embed_kernel(%arg0: i32, %arg1: memref<32x64xbf16, #tpu.memory_space<vmem>>, %arg2: memref<64x128xbf16, #tpu.memory_space<vmem>>, %arg3: memref<1x128xf32, #tpu.memory_space<vmem>>, %arg4: memref<32x128xbf16, #tpu.memory_space<vmem>>) attributes {dimension_semantics = [#tpu.dimension_semantics<parallel>], iteration_bounds = array<i64: 1>, scalar_prefetch = 0 : i64, scratch_operands = 0 : i64, tpu.core_type = #tpu.core_type<tc>, window_params = [{transform_indices = @transform_0, window_bounds = array<i64: 32, 64>}, {pipeline_mode = #tpu.pipeline_mode<synchronous>, transform_indices = @transform_1, window_bounds = array<i64: 64, 128>}, {pipeline_mode = #tpu.pipeline_mode<synchronous>, transform_indices = @transform_2, window_bounds = array<i64: 1, 128>}, {transform_indices = @transform_3, window_bounds = array<i64: 32, 128>}]} {
    %c0 = arith.constant 0 : index
    %c0_0 = arith.constant 0 : index
    %0 = vector.load %arg1[%c0, %c0_0] : memref<32x64xbf16, #tpu.memory_space<vmem>>, vector<32x64xbf16>
    %c0_1 = arith.constant 0 : index
    %c0_2 = arith.constant 0 : index
    %1 = vector.load %arg2[%c0_1, %c0_2] : memref<64x128xbf16, #tpu.memory_space<vmem>>, vector<64x128xbf16>
    %cst = arith.constant dense<0.000000e+00> : vector<32x128xf32>
    %2 = tpu.matmul %0, %1, %cst {dimension_numbers = #tpu.dot_dimension_numbers<[1], [0], [0], [1], [0, 0, 1, 1], [], []>} : vector<32x64xbf16>, vector<64x128xbf16>, vector<32x128xf32> -> vector<32x128xf32>
    %c0_3 = arith.constant 0 : index
    %c0_4 = arith.constant 0 : index
    %3 = vector.load %arg3[%c0_3, %c0_4] : memref<1x128xf32, #tpu.memory_space<vmem>>, vector<1x128xf32>
    %4 = vector.broadcast %3 : vector<1x128xf32> to vector<32x128xf32>
    %5 = arith.addf %2, %4 : vector<32x128xf32>
    %6 = arith.truncf %5 : vector<32x128xf32> to vector<32x128xbf16>
    %c0_5 = arith.constant 0 : index
    %c0_6 = arith.constant 0 : index
    %7 = vector.load %arg4[%c0_5, %c0_6] : memref<32x128xbf16, #tpu.memory_space<vmem>>, vector<32x128xbf16>
    tpu.vector_store %arg4[%c0_5, %c0_6], %6 {strides = array<i32>} : memref<32x128xbf16, #tpu.memory_space<vmem>>, vector<32x128xbf16>,
    return
  }
  func.func @transform_0(%arg0: i32) -> (i32, i32) {
    %c0_i32 = arith.constant 0 : i32
    %c0_i32_0 = arith.constant 0 : i32
    return %arg0, %c0_i32 : i32, i32
  }
  func.func @transform_1(%arg0: i32) -> (i32, i32) {
    %c0_i32 = arith.constant 0 : i32
    %c0_i32_0 = arith.constant 0 : i32
    %c0_i32_1 = arith.constant 0 : i32
    return %c0_i32, %c0_i32_0 : i32, i32
  }
  func.func @transform_2(%arg0: i32) -> (i32, i32) {
    %c0_i32 = arith.constant 0 : i32
    %c0_i32_0 = arith.constant 0 : i32
    %c0_i32_1 = arith.constant 0 : i32
    return %c0_i32, %c0_i32_0 : i32, i32
  }
  func.func @transform_3(%arg0: i32) -> (i32, i32) {
    %c0_i32 = arith.constant 0 : i32
    %c0_i32_0 = arith.constant 0 : i32
    return %arg0, %c0_i32 : i32, i32
  }
}

</mosaic_0001>

<bundles_post_ra>
// kernel: tpu_custom_call.1
= control target key start
LH: loop header
LB: loop body
LE: loop exit
PB: predicated region body
PF: predicated region fallthrough
CT: control target
= control target key end

     0   :  { %8 = vsyncpa [#allocation3], 0  ;;  %s393_s0 = inlined_call_operand.hbm [shape: bf16[32,64], index: 0, kind: input, shape index: {}]   ;;  %s394_s1 = inlined_call_operand.hbm [shape: bf16[64,128], index: 1, kind: input, shape index: {}]   ;;  %s395_s2 = inlined_call_operand.vmem [shape: f32[1,128], index: 2, kind: input, shape index: {}]   ;;  %s396_s3 = inlined_call_operand.hbm [shape: bf16[32,128], index: 3, kind: output, shape index: {}]  }
   0x1   :  { %9 = vsyncpa [#allocation6], 0 }
   0x2   :  { %10 = vsyncpa [#allocation4], 0  ;;  %s320_s12 = smov [#allocation2]   ;;  %s248_s16 = scalar_lea.hbm %s393_s0, 256 }
   0x3   :  { %s16_s13 = sshll.u32 %s320_s12, 4  ;;  %p249_p0 = scmp.ne.s32.totalorder %s393_s0, %s248_s16  ;;  %s17_s13 = int_to_ptr.vmem [resolvable:$true] %s16_s13 }
   0x4   :  { %p252_p1 = scmp.lt.u32.totalorder %s248_s16, %s393_s0 }
   0x6   :  { %p254_p2 = pnand %p252_p1, %p249_p0 }
   0x8   :  { %257 = shalt.err (!%p254_p2)
}
   0x9   :  { %s258_s21 = scalar_lea.vmem %s17_s13, 256  ;;  %p263_p4 = scmp.lt.s32.totalorder %s17_s13, %s17_s13 }
   0xa   :  { %p259_p3 = scmp.ne.s32.totalorder %s17_s13, %s258_s21  ;;  %p264_p5 = scmp.lt.s32.totalorder %s258_s21, %s258_s21 }
   0xc   :  { %p265_p6 = por %p264_p5, %p263_p4 }
   0xe   :  { %p266_p7 = pnand %p265_p6, %p259_p3 }
  0x10   :  { %269 = shalt.err (!%p266_p7)
}
  0x11   :  { %s321_s22 = smov 64   ;;  %s322_s23 = smov 4  }
  0x12   :  { %22 = dma.hbm_to_vmem [thread:$0]  %s393_s0, 256, %s17_s13, [#allocation3], %s321_s22, %s321_s22, %s322_s23  }
  0x13   :  { %s323_s26 = smov [#allocation5]   ;;  %s270_s30 = scalar_lea.hbm %s394_s1, 512 }
  0x14   :  { %s28_s27 = sshll.u32 %s323_s26, 4  ;;  %p271_p8 = scmp.ne.s32.totalorder %s394_s1, %s270_s30  ;;  %s29_s27 = int_to_ptr.vmem [resolvable:$true] %s28_s27 }
  0x15   :  { %p274_p9 = scmp.lt.u32.totalorder %s270_s30, %s394_s1 }
  0x17   :  { %p276_p10 = pnand %p274_p9, %p271_p8 }
  0x19   :  { %279 = shalt.err (!%p276_p10)
}
  0x1a   :  { %s280_s8 = scalar_lea.vmem %s29_s27, 512  ;;  %p285_p12 = scmp.lt.s32.totalorder %s29_s27, %s29_s27 }
  0x1b   :  { %p281_p11 = scmp.ne.s32.totalorder %s29_s27, %s280_s8  ;;  %p286_p13 = scmp.lt.s32.totalorder %s280_s8, %s280_s8 }
  0x1d   :  { %p287_p0 = por %p286_p13, %p285_p12 }
  0x1f   :  { %p288_p1 = pnand %p287_p0, %p281_p11 }
  0x21   :  { %291 = shalt.err (!%p288_p1)
}
  0x22   :  { %34 = dma.hbm_to_vmem [thread:$0]  %s394_s1, 512, %s29_s27, [#allocation6], %s321_s22, %s321_s22, %s322_s23  }
  0x23   :  { %314 = dma.done.wait [#allocation3], 256  }
  0x24   :  { %315 = vsyncadd [#allocation3], 4294967040 }
  0x25   :  { %316 = dma.done.wait [#allocation6], 512  }
  0x26   :  { %317 = vsyncadd [#allocation6], 4294966784  ;;  %v242_v0 = vld [vmem:[#allocation5] sm:$0xff]   ;;  %v243_v1 = vld [vmem:[#allocation5 + $0x8] sm:$0xff]   ;;  %vm97_vm0 = vcmask 523264   ;;  %s324_s11 = smov [#allocation7]  }
  0x27   :  { %225 = vmatprep.subr.bf16.mxu0 %v242_v0  ;;  %v244_v2 = vld [vmem:[#allocation5 + $0x10] sm:$0xff]   ;;  %v245_v4 = vld [vmem:[#allocation5 + $0x18] sm:$0xff]   ;;  %s178_s12 = sshll.u32 %s324_s11, 4  ;;  %s179_s12 = int_to_ptr.vmem [resolvable:$true] %s178_s12 }
  0x28   :  { %226 = vmatpush3.bf16.msra.mxu0 %v242_v0  ;;  %v246_v3 = vld [vmem:[#allocation2] sm:$0xff]   ;;  %v247_v5 = vld [vmem:[#allocation2 + $0x8] sm:$0xff]   ;;  %s292_s13 = scalar_lea.vmem %s179_s12, 256  ;;  %p297_p3 = scmp.lt.s32.totalorder %s179_s12, %s179_s12 }
  0x29   :  { %227 = vmatprep.subr.bf16.mxu0 %v243_v1  ;;  %233 = vmatprep.mubr.msk.bf16.mxu0 %vm97_vm0, %v246_v3  ;;  %v191_v7 = vld [vmem:[%s395_s2] ss:$0 sm:$0xff]  ;;  %p293_p2 = scmp.ne.s32.totalorder %s179_s12, %s292_s13  ;;  %p298_p4 = scmp.lt.s32.totalorder %s292_s13, %s292_s13 }
  0x2b   :  { %p299_p5 = por %p298_p4, %p297_p3 }
  0x2c   :  { %228 = vmatpush3.bf16.msra.mxu0 %v243_v1 }
  0x2d   :  { %229 = vmatprep.subr.bf16.mxu0 %v244_v2  ;;  %p300_p6 = pnand %p299_p5, %p293_p2 }
  0x30   :  { %230 = vmatpush3.bf16.msra.mxu0 %v244_v2 }
  0x31   :  { %231 = vmatprep.subr.bf16.mxu0 %v245_v4 }
  0x34   :  { %232 = vmatpush3.bf16.msra.mxu0 %v245_v4 }
  0x37   :  { %234 = vmatmul.mubr.msk.bf16.vlgmr.msra.gmra.mrb[0].mxu0 %vm97_vm0, %v247_v5 }
 0x10a   :  { %v235_v6 = vpop.f32.mrb[0].mxu0 }
 0x10b   :  { %v138_v8 = vpop.f32.mrb[1].mxu0  ;;  %v147_v10 = vadd.f32 %v235_v6, %v191_v7 }
 0x10c   :  { %v236_v9 = vpop.f32.mrb[2].mxu0  ;;  %v139_v13 = vadd.f32 %v191_v7, %v138_v8 }
 0x10d   :  { %v150_v11 = vadd.f32 %v236_v9, %v191_v7  ;;  %v141_v12 = vpop.f32.mrb[3].mxu0 }
 0x10e   :  { %v142_v14 = vadd.f32 %v191_v7, %v141_v12 }
 0x10f   :  { %v216_v15 = vpack.c.bf16 %v150_v11, %v147_v10 }
 0x110   :  { %v211_v16 = vpack.c.bf16 %v142_v14, %v139_v13 }
 0x111   :  { %218 = vst [vmem:[#allocation7 + $0x8] sm:$0xff] %v216_v15  }
 0x112   :  { %212 = vst [vmem:[#allocation7] sm:$0xff] %v211_v16  }
 0x113   :  { %303 = shalt.err (!%p300_p6)
}
 0x114   :  { %s304_s15 = scalar_lea.hbm %s396_s3, 256 }
 0x115   :  { %p305_p7 = scmp.ne.s32.totalorder %s396_s3, %s304_s15  ;;  %p308_p8 = scmp.lt.u32.totalorder %s304_s15, %s396_s3 }
 0x117   :  { %p310_p9 = pnand %p308_p8, %p305_p7 }
 0x119   :  { %313 = shalt.err (!%p310_p9)
}
 0x11a   :  { %184 = dma.vmem_to_hbm [thread:$0]  %s179_s12, 256, %s396_s3, [#allocation4], %s321_s22, %s321_s22, %s322_s23  }
 0x11b   :  { %318 = dma.done.wait [#allocation4], 256  }
 0x11c   :  { %319 = vsyncadd [#allocation4], 4294967040 }
 0x11d   :  { %188 = vsyncpa [#allocation3], 1 }
 0x11e   :  { %189 = vsyncpa [#allocation6], 1 }
 0x11f   :  { %190 = vsyncpa [#allocation4], 1 }

</bundles_post_ra>
